<compile_context>
chip_gen: v7x
topology: tpu7x:2x2x1
jax: 0.10.0
libtpu: 0.0.40
codegen_flags: <defaults>
</compile_context>

<pallas_src>
import functools
import math

import jax
import jax.numpy as jnp
from jax import lax
from jax.experimental import pallas as pl
from jax.experimental.pallas import tpu as pltpu

LN_EPS = 1e-5  # PyTorch LayerNorm default
_SQRT_2 = math.sqrt(2.0)

_ACTIVATIONS = {
    "gelu": lambda x: 0.5 * x * (1.0 + lax.erf(x / _SQRT_2)),   # F.gelu default (exact erf)
    "gelu_tanh": lambda x: jax.nn.gelu(x, approximate=True),
    "relu": lambda x: jnp.maximum(x, 0.0),
}


def _round_up(x, m):
    return ((x + m - 1) // m) * m


def _sublane(dtype):
    # Sublane multiple for packed dtypes: f32 -> 8, bf16 -> 16, int8/fp8 -> 32.
    return max(8, 32 // jnp.dtype(dtype).itemsize)


def _tpu_defaults():
    """(tn, tv, vmem_limit_bytes) per TPU generation (vmem None -> compiler default)."""
    kind = ""
    try:
        kind = jax.devices()[0].device_kind.lower()
    except Exception:
        pass
    if "v5 lite" in kind or "v5e" in kind or "v5lite" in kind:
        # ~0.82 TB/s HBM, 197 TF/s bf16: tn=256 / tv=2048 is roughly balanced.
        return 256, 2048, 100 * 2**20
    if "v6" in kind:
        # 918 TF/s vs 1.4 TB/s: need tn ~ 1024 for the projection to be compute-bound.
        return 1024, 2048, 112 * 2**20
    if "v7" in kind or "7x" in kind:
        # 64 MiB VMEM per TC, 2 TCs: smaller tiles, keep headroom below physical VMEM.
        return 512, 1024, 56 * 2**20
    # Unknown / older generation: conservative tiles, compiler-default VMEM limit.
    return 256, 2048, None


def _stage1_tile(tn, sub):
    # Stage-1 compute is only E x E per token; a smaller tile (that still divides
    # tn, so both stages share the same padded Np) keeps the single-buffered W1
    # plus the x / h tiles comfortably inside VMEM at large E.
    t = tn
    while t > 256 and t % 2 == 0 and (t // 2) % sub == 0:
        t //= 2
    return t


# ---------------------------------------------------------------------------
# Kernels
# ---------------------------------------------------------------------------

def _dense_act_ln_kernel(act_fn, x_ref, w1t_ref, b1_ref, gamma_ref, beta_ref, h_ref):
    # x_ref: (tn, E) compute dtype; w1t_ref: (E, E) [in, out]; b1/gamma/beta: (1, E) f32.
    h = jnp.dot(x_ref[...], w1t_ref[...], preferred_element_type=jnp.float32)
    h = act_fn(h + b1_ref[...])
    mean = jnp.mean(h, axis=-1, keepdims=True)
    centered = h - mean
    var = jnp.mean(centered * centered, axis=-1, keepdims=True)
    h = centered * lax.rsqrt(var + LN_EPS) * gamma_ref[...] + beta_ref[...]
    h_ref[...] = h.astype(h_ref.dtype)


def _projection_kernel(h_ref, w_ref, b_ref, o_ref):
    # h_ref: (tn, E); w_ref: (E, tv) [in, out]; b_ref: (1, tv) f32; o_ref: (tn, tv).
    acc = jnp.dot(h_ref[...], w_ref[...], preferred_element_type=jnp.float32)
    o_ref[...] = (acc + b_ref[...]).astype(o_ref.dtype)


# ---------------------------------------------------------------------------
# pallas_call wrappers
# ---------------------------------------------------------------------------

def _run_stage1(x2d, p, *, tn, Np, E, act_fn, vmem_limit, single_buffer):
    inv = {"pipeline_mode": pl.Buffered(1)} if single_buffer else {}
    itemsize = p["compute_dtype"].itemsize
    return pl.pallas_call(
        functools.partial(_dense_act_ln_kernel, act_fn),
        out_shape=jax.ShapeDtypeStruct((Np, E), p["compute_dtype"]),
        grid=(Np // tn,),
        in_specs=[
            pl.BlockSpec((tn, E), lambda i: (i, 0)),            # x token tile
            pl.BlockSpec((E, E), lambda i: (0, 0), **inv),      # W1^T (grid-invariant)
            pl.BlockSpec((1, E), lambda i: (0, 0), **inv),      # b1
            pl.BlockSpec((1, E), lambda i: (0, 0), **inv),      # gamma
            pl.BlockSpec((1, E), lambda i: (0, 0), **inv),      # beta
        ],
        out_specs=pl.BlockSpec((tn, E), lambda i: (i, 0)),
        compiler_params=pltpu.CompilerParams(
            dimension_semantics=("parallel",),
            vmem_limit_bytes=vmem_limit),
        cost_estimate=pl.CostEstimate(
            flops=2 * Np * E * E,
            transcendentals=Np * E,
            bytes_accessed=(2 * Np * E + E * E) * itemsize + 3 * E * 4),
    )(x2d, p["w1t"], p["b1"], p["gamma"], p["beta"])


def _run_stage2(h, p, *, tn, tv, Np, Vp, E, out_dtype, vmem_limit):
    itemsize = p["compute_dtype"].itemsize
    return pl.pallas_call(
        _projection_kernel,
        out_shape=jax.ShapeDtypeStruct((Np, Vp), out_dtype),
        # Vocab axis OUTERMOST: each Wout tile is read from HBM exactly once and
        # the megacore split gives each core a disjoint half of the weight.
        grid=(Vp // tv, Np // tn),
        in_specs=[
            pl.BlockSpec((tn, E), lambda jv, it: (it, 0)),      # h token tile
            pl.BlockSpec((E, tv), lambda jv, it: (0, jv)),      # Wout^T vocab tile
            pl.BlockSpec((1, tv), lambda jv, it: (0, jv)),      # output bias tile
        ],
        out_specs=pl.BlockSpec((tn, tv), lambda jv, it: (it, jv)),
        compiler_params=pltpu.CompilerParams(
            dimension_semantics=("parallel", "parallel"),
            vmem_limit_bytes=vmem_limit),
        cost_estimate=pl.CostEstimate(
            flops=2 * Np * E * Vp,
            transcendentals=0,
            bytes_accessed=(Vp * E + Np * E) * itemsize
                           + Np * Vp * jnp.dtype(out_dtype).itemsize),
    )(h, p["w_out_t"], p["b_out"])


# ---------------------------------------------------------------------------
# Public API
# ---------------------------------------------------------------------------

def prepare_params(params, *, compute_dtype=jnp.float32, tv=None):
    """Cast / transpose / pad the weights ONCE (outside the per-call hot path).

    Call this once per set of weights and pass the result to mask_lm_head so
    the V*E projection weight is not re-cast / re-padded / re-transposed on
    every forward call.
    """
    w1, b1 = params["w1"], params["b1"]
    gamma, beta = params["gamma"], params["beta"]
    w_out, b_out = params["weight"], params["bias"]
    E = w1.shape[0]
    V = w_out.shape[0]
    cdt = jnp.dtype(compute_dtype)

    if tv is None:
        tv = _tpu_defaults()[1]
    tv = _round_up(min(tv, V), 128)
    Vp = _round_up(V, tv)

    w_out_t = w_out.astype(cdt).T                      # [E, V]  canonical matmul RHS
    b_out_2d = b_out.reshape(1, V).astype(jnp.float32)
    if Vp != V:
        w_out_t = jnp.pad(w_out_t, ((0, 0), (0, Vp - V)))
        b_out_2d = jnp.pad(b_out_2d, ((0, 0), (0, Vp - V)))

    return {
        "w1t": w1.astype(cdt).T,                       # [E_in, E_out]
        "b1": b1.reshape(1, E).astype(jnp.float32),
        "gamma": gamma.reshape(1, E).astype(jnp.float32),
        "beta": beta.reshape(1, E).astype(jnp.float32),
        "w_out_t": w_out_t,                            # [E, Vp]
        "b_out": b_out_2d,                             # [1, Vp] f32
        "embed_dim": E,
        "vocab_size": V,
        "tv": tv,
        "compute_dtype": cdt,
    }


def mask_lm_head(features, params, masked_tokens=None, *, tn=None, tv=None,
                 compute_dtype=None, out_dtype=None, vmem_limit_bytes=None,
                 activation="gelu"):
    """features: [..., E] -> logits [..., V] (MaskLMHead forward).

    `params` may be the raw PyTorch-layout dict (w1/b1/gamma/beta/weight/bias)
    or the result of prepare_params() (preferred for repeated calls).
    """
    if "w_out_t" not in params:
        # Raw params: cast / transpose / pad once here (prefer prepare_params()
        # at init time so this V*E prep isn't redone per call).
        params = prepare_params(
            params,
            compute_dtype=compute_dtype if compute_dtype is not None else features.dtype,
            tv=tv)

    cdt = params["compute_dtype"]
    E = params["embed_dim"]
    V = params["vocab_size"]
    tv = params["tv"]
    Vp = params["w_out_t"].shape[1]

    if masked_tokens is not None:
        # TODO(synk): move this gather into stage 1 via
        # PrefetchScalarGridSpec(num_scalar_prefetch=1) + a pl.Element row-gather
        # index_map (needs a static max masked-token count); boolean masks are
        # dynamic-size and stay outside jit.
        features = features[masked_tokens]

    orig_shape = features.shape
    if out_dtype is None:
        out_dtype = features.dtype
    x2d = features.reshape(-1, E).astype(cdt)
    N = x2d.shape[0]

    d_tn, _, d_vmem = _tpu_defaults()
    if tn is None:
        tn = d_tn
    if vmem_limit_bytes is None:
        vmem_limit_bytes = d_vmem

    sub = _sublane(cdt)
    tn = _round_up(min(tn, N), sub)
    Np = _round_up(N, tn)
    if Np != N:
        x2d = jnp.pad(x2d, ((0, Np - N), (0, 0)))

    tn1 = _stage1_tile(tn, sub)   # divides tn, so both stages share the padded Np
    act_fn = _ACTIVATIONS[activation]

    # Stage 1: h = LayerNorm(act(x @ W1^T + b1)), stored in compute dtype.
    try:
        h = _run_stage1(x2d, params, tn=tn1, Np=Np, E=E, act_fn=act_fn,
                        vmem_limit=vmem_limit_bytes, single_buffer=True)
    except Exception:
        # This Pallas build rejected pl.Buffered(1); fall back to default
        # double-buffering of the grid-invariant inputs.
        h = _run_stage1(x2d, params, tn=tn1, Np=Np, E=E, act_fn=act_fn,
                        vmem_limit=vmem_limit_bytes, single_buffer=False)

    # Stage 2: logits = h @ Wout^T + b_out.
    logits = _run_stage2(h, params, tn=tn, tv=tv, Np=Np, Vp=Vp, E=E,
                         out_dtype=out_dtype, vmem_limit=vmem_limit_bytes)

    logits = logits[:N, :V]
    return logits.reshape(*orig_shape[:-1], V)


# ---------------------------------------------------------------------------
# Synthetic init + reference + test
# ---------------------------------------------------------------------------

def init_params(key, embed_dim, output_dim, dtype=jnp.float32):
    """Deterministic synthetic parameter init (matches module shapes)."""
    k1, k2, k3 = jax.random.split(key, 3)
    lim1 = 1.0 / math.sqrt(embed_dim)
    return {
        # nn.Linear(embed_dim, embed_dim): weight [E, E] (out, in), bias [E]
        "w1": jax.random.uniform(k1, (embed_dim, embed_dim), dtype, -lim1, lim1),
        "b1": jax.random.uniform(k2, (embed_dim,), dtype, -lim1, lim1),
        # LayerNorm(embed_dim)
        "gamma": jnp.ones((embed_dim,), dtype),
        "beta": jnp.zeros((embed_dim,), dtype),
        # tied / output projection weight: nn.Linear(E, V, bias=False).weight -> [V, E]
        "weight": jax.random.uniform(k3, (output_dim, embed_dim), dtype, -lim1, lim1),
        # bias: zeros(V)
        "bias": jnp.zeros((output_dim,), dtype),
    }


def _reference(features, params):
    # Pure-JAX reference (f32) for correctness checks.
    x = features @ params["w1"].T + params["b1"]
    x = _ACTIVATIONS["gelu"](x)
    mean = jnp.mean(x, axis=-1, keepdims=True)
    var = jnp.mean((x - mean) ** 2, axis=-1, keepdims=True)
    x = (x - mean) * lax.rsqrt(var + LN_EPS) * params["gamma"] + params["beta"]
    return x @ params["weight"].T + params["bias"]


if __name__ == "__main__":
    key = jax.random.PRNGKey(0)
    k_feat, k_param = jax.random.split(key)

    batch, seq, embed_dim, output_dim = 2, 8, 128, 256
    features = jax.random.normal(k_feat, (batch, seq, embed_dim), jnp.float32)
    params = init_params(k_param, embed_dim, output_dim)
    ref = _reference(features, params)

    # 1) f32, default per-generation tiles (capped to this small problem).
    out = mask_lm_head(features, params)
    out = jax.block_until_ready(out)
    assert out.shape == (batch, seq, output_dim)
    assert jnp.allclose(out, ref, atol=1e-4, rtol=1e-4), "f32 mismatch vs reference"

    # 2) f32, forced multi-tile path (projection grid = (2 vocab, 2 token) tiles).
    out2 = mask_lm_head(features, params, tn=8, tv=128)
    out2 = jax.block_until_ready(out2)
    assert jnp.allclose(out2, ref, atol=1e-4, rtol=1e-4), "tiled-path mismatch"

    # 3) bf16 compute path with weights prepared once (loosened tolerance).
    prepared = prepare_params(params, compute_dtype=jnp.bfloat16, tv=128)
    out3 = mask_lm_head(features, prepared, tn=16, out_dtype=jnp.float32)
    out3 = jax.block_until_ready(out3)
    assert out3.shape == (batch, seq, output_dim)
    bf16_err = float(jnp.max(jnp.abs(out3 - ref)))
    assert bf16_err < 5e-2, f"bf16 path error too large: {bf16_err}"

    # 4) masked_tokens path (boolean mask over [batch, seq], as in the module).
    masked = jnp.zeros((batch, seq), dtype=bool).at[0, 1].set(True)
    masked = masked.at[0, 4].set(True).at[1, 0].set(True).at[1, 6].set(True).at[1, 7].set(True)
    out4 = mask_lm_head(features, prepared, masked_tokens=masked, out_dtype=jnp.float32)
    out4 = jax.block_until_ready(out4)
    ref4 = _reference(features[masked], params)
    assert out4.shape == ref4.shape
    assert float(jnp.max(jnp.abs(out4 - ref4))) < 5e-2, "masked_tokens path mismatch"

    print("KERNEL_OK")
</pallas_src>

<mosaic_0001>
module attributes {stable_mosaic.version = 11 : i64} {
  func.func @_dense_act_ln_kernel(%arg0: i32, %arg1: memref<16x128xf32, #tpu.memory_space<vmem>>, %arg2: memref<128x128xf32, #tpu.memory_space<vmem>>, %arg3: memref<1x128xf32, #tpu.memory_space<vmem>>, %arg4: memref<1x128xf32, #tpu.memory_space<vmem>>, %arg5: memref<1x128xf32, #tpu.memory_space<vmem>>, %arg6: memref<16x128xf32, #tpu.memory_space<vmem>>) attributes {dimension_semantics = [#tpu.dimension_semantics<parallel>], iteration_bounds = array<i64: 1>, scalar_prefetch = 0 : i64, scratch_operands = 0 : i64, tpu.core_type = #tpu.core_type<tc>, window_params = [{transform_indices = @transform_0, window_bounds = array<i64: 16, 128>}, {pipeline_mode = #tpu.pipeline_mode<synchronous>, transform_indices = @transform_1, window_bounds = array<i64: 128, 128>}, {pipeline_mode = #tpu.pipeline_mode<synchronous>, transform_indices = @transform_2, window_bounds = array<i64: 1, 128>}, {pipeline_mode = #tpu.pipeline_mode<synchronous>, transform_indices = @transform_3, window_bounds = array<i64: 1, 128>}, {pipeline_mode = #tpu.pipeline_mode<synchronous>, transform_indices = @transform_4, window_bounds = array<i64: 1, 128>}, {transform_indices = @transform_5, window_bounds = array<i64: 16, 128>}]} {
    %c0 = arith.constant 0 : index
    %c0_0 = arith.constant 0 : index
    %0 = vector.load %arg1[%c0, %c0_0] : memref<16x128xf32, #tpu.memory_space<vmem>>, vector<16x128xf32>
    %c0_1 = arith.constant 0 : index
    %c0_2 = arith.constant 0 : index
    %1 = vector.load %arg2[%c0_1, %c0_2] : memref<128x128xf32, #tpu.memory_space<vmem>>, vector<128x128xf32>
    %cst = arith.constant dense<0.000000e+00> : vector<16x128xf32>
    %2 = tpu.matmul %0, %1, %cst {dimension_numbers = #tpu.dot_dimension_numbers<[1], [0], [0], [1], [0, 0, 1, 1], [], []>} : vector<16x128xf32>, vector<128x128xf32>, vector<16x128xf32> -> vector<16x128xf32>
    %c0_3 = arith.constant 0 : index
    %c0_4 = arith.constant 0 : index
    %3 = vector.load %arg3[%c0_3, %c0_4] : memref<1x128xf32, #tpu.memory_space<vmem>>, vector<1x128xf32>
    %4 = vector.broadcast %3 : vector<1x128xf32> to vector<16x128xf32>
    %5 = arith.addf %2, %4 : vector<16x128xf32>
    %cst_5 = arith.constant 5.000000e-01 : f32
    %6 = vector.broadcast %cst_5 : f32 to vector<16x128xf32>
    %7 = arith.mulf %6, %5 : vector<16x128xf32>
    %cst_6 = arith.constant 1.41421354 : f32
    %8 = vector.broadcast %cst_6 : f32 to vector<16x128xf32>
    %9 = arith.divf %5, %8 : vector<16x128xf32>
    %10 = math.erf %9 : vector<16x128xf32>
    %cst_7 = arith.constant 1.000000e+00 : f32
    %11 = vector.broadcast %cst_7 : f32 to vector<16x128xf32>
    %12 = arith.addf %11, %10 : vector<16x128xf32>
    %13 = arith.mulf %7, %12 : vector<16x128xf32>
    %cst_8 = arith.constant dense<0.000000e+00> : vector<16xf32>
    %14 = vector.multi_reduction <add>, %13, %cst_8 [1] : vector<16x128xf32> to vector<16xf32>
    %15 = vector.shape_cast %14 : vector<16xf32> to vector<16x1xf32>
    %cst_9 = arith.constant 1.280000e+02 : f32
    %16 = vector.broadcast %cst_9 : f32 to vector<16x1xf32>
    %17 = arith.divf %15, %16 : vector<16x1xf32>
    %18 = vector.broadcast %17 : vector<16x1xf32> to vector<16x128xf32>
    %19 = arith.subf %13, %18 : vector<16x128xf32>
    %20 = arith.mulf %19, %19 : vector<16x128xf32>
    %cst_10 = arith.constant dense<0.000000e+00> : vector<16xf32>
    %21 = vector.multi_reduction <add>, %20, %cst_10 [1] : vector<16x128xf32> to vector<16xf32>
    %22 = vector.shape_cast %21 : vector<16xf32> to vector<16x1xf32>
    %cst_11 = arith.constant 1.280000e+02 : f32
    %23 = vector.broadcast %cst_11 : f32 to vector<16x1xf32>
    %24 = arith.divf %22, %23 : vector<16x1xf32>
    %cst_12 = arith.constant 9.99999974E-6 : f32
    %25 = vector.broadcast %cst_12 : f32 to vector<16x1xf32>
    %26 = arith.addf %24, %25 : vector<16x1xf32>
    %27 = math.rsqrt %26 : vector<16x1xf32>
    %28 = vector.broadcast %27 : vector<16x1xf32> to vector<16x128xf32>
    %29 = arith.mulf %19, %28 : vector<16x128xf32>
    %c0_13 = arith.constant 0 : index
    %c0_14 = arith.constant 0 : index
    %30 = vector.load %arg4[%c0_13, %c0_14] : memref<1x128xf32, #tpu.memory_space<vmem>>, vector<1x128xf32>
    %31 = vector.broadcast %30 : vector<1x128xf32> to vector<16x128xf32>
    %32 = arith.mulf %29, %31 : vector<16x128xf32>
    %c0_15 = arith.constant 0 : index
    %c0_16 = arith.constant 0 : index
    %33 = vector.load %arg5[%c0_15, %c0_16] : memref<1x128xf32, #tpu.memory_space<vmem>>, vector<1x128xf32>
    %34 = vector.broadcast %33 : vector<1x128xf32> to vector<16x128xf32>
    %35 = arith.addf %32, %34 : vector<16x128xf32>
    %c0_17 = arith.constant 0 : index
    %c0_18 = arith.constant 0 : index
    %36 = vector.load %arg6[%c0_17, %c0_18] : memref<16x128xf32, #tpu.memory_space<vmem>>, vector<16x128xf32>
    tpu.vector_store %arg6[%c0_17, %c0_18], %35 {strides = array<i32>} : memref<16x128xf32, #tpu.memory_space<vmem>>, vector<16x128xf32>,
    return
  }
  func.func @transform_0(%arg0: i32) -> (i32, i32) {
    %c0_i32 = arith.constant 0 : i32
    %c0_i32_0 = arith.constant 0 : i32
    return %arg0, %c0_i32 : i32, i32
  }
  func.func @transform_1(%arg0: i32) -> (i32, i32) {
    %c0_i32 = arith.constant 0 : i32
    %c0_i32_0 = arith.constant 0 : i32
    %c0_i32_1 = arith.constant 0 : i32
    return %c0_i32, %c0_i32_0 : i32, i32
  }
  func.func @transform_2(%arg0: i32) -> (i32, i32) {
    %c0_i32 = arith.constant 0 : i32
    %c0_i32_0 = arith.constant 0 : i32
    %c0_i32_1 = arith.constant 0 : i32
    return %c0_i32, %c0_i32_0 : i32, i32
  }
  func.func @transform_3(%arg0: i32) -> (i32, i32) {
    %c0_i32 = arith.constant 0 : i32
    %c0_i32_0 = arith.constant 0 : i32
    %c0_i32_1 = arith.constant 0 : i32
    return %c0_i32, %c0_i32_0 : i32, i32
  }
  func.func @transform_4(%arg0: i32) -> (i32, i32) {
    %c0_i32 = arith.constant 0 : i32
    %c0_i32_0 = arith.constant 0 : i32
    %c0_i32_1 = arith.constant 0 : i32
    return %c0_i32, %c0_i32_0 : i32, i32
  }
  func.func @transform_5(%arg0: i32) -> (i32, i32) {
    %c0_i32 = arith.constant 0 : i32
    %c0_i32_0 = arith.constant 0 : i32
    return %arg0, %c0_i32 : i32, i32
  }
}

module attributes {stable_mosaic.version = 11 : i64} {
  func.func @_dense_act_ln_kernel(%arg0: i32, %arg1: memref<16x128xf32, #tpu.memory_space<vmem>>, %arg2: memref<128x128xf32, #tpu.memory_space<vmem>>, %arg3: memref<1x128xf32, #tpu.memory_space<vmem>>, %arg4: memref<1x128xf32, #tpu.memory_space<vmem>>, %arg5: memref<1x128xf32, #tpu.memory_space<vmem>>, %arg6: memref<16x128xf32, #tpu.memory_space<vmem>>) attributes {dimension_semantics = [#tpu.dimension_semantics<parallel>], iteration_bounds = array<i64: 1>, scalar_prefetch = 0 : i64, scratch_operands = 0 : i64, tpu.core_type = #tpu.core_type<tc>, window_params = [{transform_indices = @transform_0, window_bounds = array<i64: 16, 128>}, {pipeline_mode = #tpu.pipeline_mode<synchronous>, transform_indices = @transform_1, window_bounds = array<i64: 128, 128>}, {pipeline_mode = #tpu.pipeline_mode<synchronous>, transform_indices = @transform_2, window_bounds = array<i64: 1, 128>}, {pipeline_mode = #tpu.pipeline_mode<synchronous>, transform_indices = @transform_3, window_bounds = array<i64: 1, 128>}, {pipeline_mode = #tpu.pipeline_mode<synchronous>, transform_indices = @transform_4, window_bounds = array<i64: 1, 128>}, {transform_indices = @transform_5, window_bounds = array<i64: 16, 128>}]} {
    %c0 = arith.constant 0 : index
    %c0_0 = arith.constant 0 : index
    %0 = vector.load %arg1[%c0, %c0_0] : memref<16x128xf32, #tpu.memory_space<vmem>>, vector<16x128xf32>
    %c0_1 = arith.constant 0 : index
    %c0_2 = arith.constant 0 : index
    %1 = vector.load %arg2[%c0_1, %c0_2] : memref<128x128xf32, #tpu.memory_space<vmem>>, vector<128x128xf32>
    %cst = arith.constant dense<0.000000e+00> : vector<16x128xf32>
    %2 = tpu.matmul %0, %1, %cst {dimension_numbers = #tpu.dot_dimension_numbers<[1], [0], [0], [1], [0, 0, 1, 1], [], []>} : vector<16x128xf32>, vector<128x128xf32>, vector<16x128xf32> -> vector<16x128xf32>
    %c0_3 = arith.constant 0 : index
    %c0_4 = arith.constant 0 : index
    %3 = vector.load %arg3[%c0_3, %c0_4] : memref<1x128xf32, #tpu.memory_space<vmem>>, vector<1x128xf32>
    %4 = vector.broadcast %3 : vector<1x128xf32> to vector<16x128xf32>
    %5 = arith.addf %2, %4 : vector<16x128xf32>
    %cst_5 = arith.constant 5.000000e-01 : f32
    %6 = vector.broadcast %cst_5 : f32 to vector<16x128xf32>
    %7 = arith.mulf %6, %5 : vector<16x128xf32>
    %cst_6 = arith.constant 1.41421354 : f32
    %8 = vector.broadcast %cst_6 : f32 to vector<16x128xf32>
    %9 = arith.divf %5, %8 : vector<16x128xf32>
    %10 = math.erf %9 : vector<16x128xf32>
    %cst_7 = arith.constant 1.000000e+00 : f32
    %11 = vector.broadcast %cst_7 : f32 to vector<16x128xf32>
    %12 = arith.addf %11, %10 : vector<16x128xf32>
    %13 = arith.mulf %7, %12 : vector<16x128xf32>
    %cst_8 = arith.constant dense<0.000000e+00> : vector<16xf32>
    %14 = vector.multi_reduction <add>, %13, %cst_8 [1] : vector<16x128xf32> to vector<16xf32>
    %15 = vector.shape_cast %14 : vector<16xf32> to vector<16x1xf32>
    %cst_9 = arith.constant 1.280000e+02 : f32
    %16 = vector.broadcast %cst_9 : f32 to vector<16x1xf32>
    %17 = arith.divf %15, %16 : vector<16x1xf32>
    %18 = vector.broadcast %17 : vector<16x1xf32> to vector<16x128xf32>
    %19 = arith.subf %13, %18 : vector<16x128xf32>
    %20 = arith.mulf %19, %19 : vector<16x128xf32>
    %cst_10 = arith.constant dense<0.000000e+00> : vector<16xf32>
    %21 = vector.multi_reduction <add>, %20, %cst_10 [1] : vector<16x128xf32> to vector<16xf32>
    %22 = vector.shape_cast %21 : vector<16xf32> to vector<16x1xf32>
    %cst_11 = arith.constant 1.280000e+02 : f32
    %23 = vector.broadcast %cst_11 : f32 to vector<16x1xf32>
    %24 = arith.divf %22, %23 : vector<16x1xf32>
    %cst_12 = arith.constant 9.99999974E-6 : f32
    %25 = vector.broadcast %cst_12 : f32 to vector<16x1xf32>
    %26 = arith.addf %24, %25 : vector<16x1xf32>
    %27 = math.rsqrt %26 : vector<16x1xf32>
    %28 = vector.broadcast %27 : vector<16x1xf32> to vector<16x128xf32>
    %29 = arith.mulf %19, %28 : vector<16x128xf32>
    %c0_13 = arith.constant 0 : index
    %c0_14 = arith.constant 0 : index
    %30 = vector.load %arg4[%c0_13, %c0_14] : memref<1x128xf32, #tpu.memory_space<vmem>>, vector<1x128xf32>
    %31 = vector.broadcast %30 : vector<1x128xf32> to vector<16x128xf32>
    %32 = arith.mulf %29, %31 : vector<16x128xf32>
    %c0_15 = arith.constant 0 : index
    %c0_16 = arith.constant 0 : index
    %33 = vector.load %arg5[%c0_15, %c0_16] : memref<1x128xf32, #tpu.memory_space<vmem>>, vector<1x128xf32>
    %34 = vector.broadcast %33 : vector<1x128xf32> to vector<16x128xf32>
    %35 = arith.addf %32, %34 : vector<16x128xf32>
    %c0_17 = arith.constant 0 : index
    %c0_18 = arith.constant 0 : index
    %36 = vector.load %arg6[%c0_17, %c0_18] : memref<16x128xf32, #tpu.memory_space<vmem>>, vector<16x128xf32>
    tpu.vector_store %arg6[%c0_17, %c0_18], %35 {strides = array<i32>} : memref<16x128xf32, #tpu.memory_space<vmem>>, vector<16x128xf32>,
    return
  }
  func.func @transform_0(%arg0: i32) -> (i32, i32) {
    %c0_i32 = arith.constant 0 : i32
    %c0_i32_0 = arith.constant 0 : i32
    return %arg0, %c0_i32 : i32, i32
  }
  func.func @transform_1(%arg0: i32) -> (i32, i32) {
    %c0_i32 = arith.constant 0 : i32
    %c0_i32_0 = arith.constant 0 : i32
    %c0_i32_1 = arith.constant 0 : i32
    return %c0_i32, %c0_i32_0 : i32, i32
  }
  func.func @transform_2(%arg0: i32) -> (i32, i32) {
    %c0_i32 = arith.constant 0 : i32
    %c0_i32_0 = arith.constant 0 : i32
    %c0_i32_1 = arith.constant 0 : i32
    return %c0_i32, %c0_i32_0 : i32, i32
  }
  func.func @transform_3(%arg0: i32) -> (i32, i32) {
    %c0_i32 = arith.constant 0 : i32
    %c0_i32_0 = arith.constant 0 : i32
    %c0_i32_1 = arith.constant 0 : i32
    return %c0_i32, %c0_i32_0 : i32, i32
  }
  func.func @transform_4(%arg0: i32) -> (i32, i32) {
    %c0_i32 = arith.constant 0 : i32
    %c0_i32_0 = arith.constant 0 : i32
    %c0_i32_1 = arith.constant 0 : i32
    return %c0_i32, %c0_i32_0 : i32, i32
  }
  func.func @transform_5(%arg0: i32) -> (i32, i32) {
    %c0_i32 = arith.constant 0 : i32
    %c0_i32_0 = arith.constant 0 : i32
    return %arg0, %c0_i32 : i32, i32
  }
}

</mosaic_0001>

<bundles_post_ra>
// kernel: tpu_custom_call.1
= control target key start
LH: loop header
LB: loop body
LE: loop exit
PB: predicated region body
PF: predicated region fallthrough
CT: control target
= control target key end

     0   :  { %10 = vsyncpa [#allocation3], 0  ;;  %s483_s0 = inlined_call_operand.hbm [shape: f32[16,128], index: 0, kind: input, shape index: {}]   ;;  %s484_s1 = inlined_call_operand.hbm [shape: f32[128,128], index: 1, kind: input, shape index: {}]   ;;  %s485_s2 = inlined_call_operand.vmem [shape: f32[1,128], index: 2, kind: input, shape index: {}]   ;;  %s486_s3 = inlined_call_operand.vmem [shape: f32[1,128], index: 3, kind: input, shape index: {}]   ;;  %s487_s4 = inlined_call_operand.vmem [shape: f32[1,128], index: 4, kind: input, shape index: {}]   ;;  %s488_s5 = inlined_call_operand.hbm [shape: f32[16,128], index: 5, kind: output, shape index: {}]  }
   0x1   :  { %11 = vsyncpa [#allocation6], 0 }
   0x2   :  { %12 = vsyncpa [#allocation4], 0  ;;  %s394_s18 = smov [#allocation2]   ;;  %s322_s22 = scalar_lea.hbm %s483_s0, 256 }
   0x3   :  { %s18_s19 = sshll.u32 %s394_s18, 4  ;;  %p323_p0 = scmp.ne.s32.totalorder %s483_s0, %s322_s22  ;;  %s19_s19 = int_to_ptr.vmem [resolvable:$true] %s18_s19 }
   0x4   :  { %p326_p1 = scmp.lt.u32.totalorder %s322_s22, %s483_s0 }
   0x6   :  { %p328_p2 = pnand %p326_p1, %p323_p0 }
   0x8   :  { %331 = shalt.err (!%p328_p2)
}
   0x9   :  { %s332_s27 = scalar_lea.vmem %s19_s19, 256  ;;  %p337_p4 = scmp.lt.s32.totalorder %s19_s19, %s19_s19 }
   0xa   :  { %p333_p3 = scmp.ne.s32.totalorder %s19_s19, %s332_s27  ;;  %p338_p5 = scmp.lt.s32.totalorder %s332_s27, %s332_s27 }
   0xc   :  { %p339_p6 = por %p338_p5, %p337_p4 }
   0xe   :  { %p340_p7 = pnand %p339_p6, %p333_p3 }
  0x10   :  { %343 = shalt.err (!%p340_p7)
}
  0x11   :  { %s395_s28 = smov 128   ;;  %s396_s29 = smov 8  }
  0x12   :  { %24 = dma.hbm_to_vmem [thread:$0]  %s483_s0, 256, %s19_s19, [#allocation3], %s395_s28, %s395_s28, %s396_s29  }
  0x13   :  { %s397_s7 = smov [#allocation5]   ;;  %s344_s11 = scalar_lea.hbm %s484_s1, 2048 }
  0x14   :  { %s30_s8 = sshll.u32 %s397_s7, 4  ;;  %p345_p8 = scmp.ne.s32.totalorder %s484_s1, %s344_s11  ;;  %s31_s8 = int_to_ptr.vmem [resolvable:$true] %s30_s8 }
  0x15   :  { %p348_p9 = scmp.lt.u32.totalorder %s344_s11, %s484_s1 }
  0x17   :  { %p350_p10 = pnand %p348_p9, %p345_p8 }
  0x19   :  { %353 = shalt.err (!%p350_p10)
}
  0x1a   :  { %s354_s16 = scalar_lea.vmem %s31_s8, 2048  ;;  %p359_p12 = scmp.lt.s32.totalorder %s31_s8, %s31_s8 }
  0x1b   :  { %p355_p11 = scmp.ne.s32.totalorder %s31_s8, %s354_s16  ;;  %p360_p13 = scmp.lt.s32.totalorder %s354_s16, %s354_s16 }
  0x1d   :  { %p361_p0 = por %p360_p13, %p359_p12 }
  0x1f   :  { %p362_p1 = pnand %p361_p0, %p355_p11 }
  0x21   :  { %365 = shalt.err (!%p362_p1)
}
  0x22   :  { %36 = dma.hbm_to_vmem [thread:$0]  %s484_s1, 2048, %s31_s8, [#allocation6], %s395_s28, %s395_s28, %s396_s29  }
  0x23   :  { %388 = dma.done.wait [#allocation3], 256  }
  0x24   :  { %389 = vsyncadd [#allocation3], 4294967040 }
  0x25   :  { %390 = dma.done.wait [#allocation6], 2048  }
  0x26   :  { %391 = vsyncadd [#allocation6], 4294965248  ;;  %v51_v0 = vld [vmem:[#allocation5] sm:$0xff]  ;;  %v52_v1 = vld [vmem:[#allocation5 + $0x8] sm:$0xff]  ;;  %s398_s22 = smov [#allocation7]  }
  0x27   :  { %v53_v2 = vld [vmem:[#allocation5 + $0x10] sm:$0xff]  ;;  %v277_v3 = vpack.c.bf16 %v52_v1, %v51_v0  ;;  %v54_v4 = vld [vmem:[#allocation5 + $0x18] sm:$0xff]  ;;  %v55_v6 = vld [vmem:[#allocation5 + $0x20] sm:$0xff]  ;;  %s208_s23 = sshll.u32 %s398_s22, 4  ;;  %s209_s23 = int_to_ptr.vmem [resolvable:$true] %s208_s23 }
  0x28   :  { %v281_v5 = vpack.c.bf16 %v54_v4, %v53_v2  ;;  %v56_v7 = vld [vmem:[#allocation5 + $0x28] sm:$0xff]  ;;  %v49_v9 = vld [vmem:[#allocation2] sm:$0xff]  ;;  %v58_v11 = vld [vmem:[#allocation5 + $0x38] sm:$0xff]  ;;  %s366_s24 = scalar_lea.vmem %s209_s23, 256  ;;  %p371_p3 = scmp.lt.s32.totalorder %s209_s23, %s209_s23 }
  0x29   :  { %278 = vmatprep.subr.bf16.mxu0 %v277_v3  ;;  %v285_v8 = vpack.c.bf16 %v56_v7, %v55_v6  ;;  %v57_v10 = vld [vmem:[#allocation5 + $0x30] sm:$0xff]  ;;  %274 = vmatprep.mubr.f32.mxu0 %v49_v9  ;;  %v59_v13 = vld [vmem:[#allocation5 + $0x40] sm:$0xff]  ;;  %v60_v14 = vld [vmem:[#allocation5 + $0x48] sm:$0xff]  ;;  %p367_p2 = scmp.ne.s32.totalorder %s209_s23, %s366_s24  ;;  %p372_p4 = scmp.lt.s32.totalorder %s366_s24, %s366_s24 }
  0x2a   :  { %280 = vmatpush3.bf16.msra.mxu0 %v277_v3  ;;  %v289_v12 = vpack.c.bf16 %v58_v11, %v57_v10  ;;  %v293_v15 = vpack.c.bf16 %v60_v14, %v59_v13  ;;  %v61_v16 = vld [vmem:[#allocation5 + $0x50] sm:$0xff]  ;;  %v62_v17 = vld [vmem:[#allocation5 + $0x58] sm:$0xff]  ;;  %v63_v19 = vld [vmem:[#allocation5 + $0x60] sm:$0xff] }
  0x2b   :  { %282 = vmatprep.subr.bf16.mxu0 %v281_v5  ;;  %v297_v18 = vpack.c.bf16 %v62_v17, %v61_v16  ;;  %v64_v20 = vld [vmem:[#allocation5 + $0x68] sm:$0xff]  ;;  %v65_v22 = vld [vmem:[#allocation5 + $0x70] sm:$0xff]  ;;  %v66_v23 = vld [vmem:[#allocation5 + $0x78] sm:$0xff]  ;;  %p373_p5 = por %p372_p4, %p371_p3 }
  0x2c   :  { %v301_v21 = vpack.c.bf16 %v64_v20, %v63_v19  ;;  %v305_v24 = vpack.c.bf16 %v66_v23, %v65_v22  ;;  %v50_v25 = vld [vmem:[#allocation2 + $0x8] sm:$0xff]  ;;  %v221_v26 = vld [vmem:[%s485_s2] ss:$0 sm:$0xff] }
  0x2d   :  { %v222_v56 = vld [vmem:[%s486_s3] ss:$0 sm:$0xff]  ;;  %p374_p6 = pnand %p373_p5, %p367_p2 }
  0x2e   :  { %284 = vmatpush3.bf16.msra.mxu0 %v281_v5  ;;  %v223_v58 = vld [vmem:[%s487_s4] ss:$0 sm:$0xff] }
  0x2f   :  { %286 = vmatprep.subr.bf16.mxu0 %v285_v8 }
  0x32   :  { %288 = vmatpush3.bf16.msra.mxu0 %v285_v8 }
  0x33   :  { %290 = vmatprep.subr.bf16.mxu0 %v289_v12 }
  0x36   :  { %292 = vmatpush3.bf16.msra.mxu0 %v289_v12 }
  0x37   :  { %294 = vmatprep.subr.bf16.mxu0 %v293_v15 }
  0x3a   :  { %296 = vmatpush3.bf16.msra.mxu0 %v293_v15 }
  0x3b   :  { %298 = vmatprep.subr.bf16.mxu0 %v297_v18 }
  0x3e   :  { %300 = vmatpush3.bf16.msra.mxu0 %v297_v18 }
  0x3f   :  { %302 = vmatprep.subr.bf16.mxu0 %v301_v21 }
  0x42   :  { %304 = vmatpush3.bf16.msra.mxu0 %v301_v21 }
  0x43   :  { %306 = vmatprep.subr.bf16.mxu0 %v305_v24 }
  0x46   :  { %308 = vmatpush3.bf16.msra.mxu0 %v305_v24 }
  0x49   :  { %275 = vmatmul.mubr.f32.vlgmr.msra.gmra.mrb[0].mxu0 %v50_v25 }
 0x11c   :  { %v276_v27 = vpop.f32.mrb[0].mxu0 }
 0x11d   :  { %v146_v28 = vadd.f32 %v276_v27, %v221_v26  ;;  %v140_v29 = vpop.f32.mrb[1].mxu0 }
 0x11e   :  { %v141_v30 = vadd.f32 %v221_v26, %v140_v29 }
 0x11f   :  { %v153_v31 = vmul.f32 0.70710677, %v146_v28  ;;  %v150_v39 = vmul.f32 0.5, %v146_v28 }
 0x120   :  { %v152_v32 = vmul.f32 0.70710677, %v141_v30  ;;  %v149_v35 = vmul.f32 0.5, %v141_v30 }
 0x121   :  { %314 = verf.f32 %v153_v31 }
 0x122   :  { %316 = verf.f32 %v152_v32 }
 0x12b   :  { %v315_v33 = vpop.eup %314 }
 0x12c   :  { %v317_v34 = vpop.eup %316  ;;  %v157_v38 = vadd.f32 1.0, %v315_v33 }
 0x12d   :  { %v156_v36 = vadd.f32 1.0, %v317_v34 }
 0x12e   :  { %v159_v40 = vmul.f32 %v157_v38, %v150_v39 }
 0x12f   :  { %v158_v37 = vmul.f32 %v156_v36, %v149_v35 }
 0x131   :  { %160 = vadd.xlane.f32.xlu0 %v158_v37 }
 0x135   :  { %162 = vadd.xlane.f32.xlu0 %v159_v40 }
 0x1be   :  { %v161_v41 = vpop.xlane.xlu0 %160 }
 0x1bf   :  { %v165_v42 = vmul.f32 0.0078125, %v161_v41 }
 0x1c1   :  { %v167_v43 = vsub.f32 %v158_v37, %v165_v42 }
 0x1c2   :  { %v163_v44 = vpop.xlane.xlu0 %162 }
 0x1c3   :  { %v166_v45 = vmul.f32 0.0078125, %v163_v44  ;;  %v169_v46 = vmul.f32 %v167_v43, %v167_v43 }
 0x1c5   :  { %v168_v47 = vsub.f32 %v159_v40, %v166_v45  ;;  %171 = vadd.xlane.f32.xlu1 %v169_v46 }
 0x1c7   :  { %v170_v48 = vmul.f32 %v168_v47, %v168_v47 }
 0x1c9   :  { %173 = vadd.xlane.f32.xlu1 %v170_v48 }
 0x252   :  { %v172_v49 = vpop.xlane.xlu1 %171 }
 0x253   :  { %v175_v50 = vmul.f32 0.0078125, %v172_v49 }
 0x255   :  { %v177_v51 = vadd.f32 1e-05, %v175_v50 }
 0x256   :  { %v174_v52 = vpop.xlane.xlu1 %173 }
 0x257   :  { %318 = vrsqrt.f32 %v177_v51  ;;  %v176_v53 = vmul.f32 0.0078125, %v174_v52 }
 0x259   :  { %v178_v54 = vadd.f32 1e-05, %v176_v53 }
 0x25b   :  { %320 = vrsqrt.f32 %v178_v54 }
 0x261   :  { %v319_v55 = vpop.eup %318 }
 0x262   :  { %v181_v57 = vmul.f32 %v319_v55, %v167_v43 }
 0x264   :  { %v190_v59 = vmul.f32 %v222_v56, %v181_v57 }
 0x265   :  { %v321_v60 = vpop.eup %320 }
 0x266   :  { %v182_v61 = vmul.f32 %v321_v60, %v168_v47  ;;  %v199_v62 = vadd.f32 %v223_v58, %v190_v59 }
 0x268   :  { %v191_v63 = vmul.f32 %v222_v56, %v182_v61  ;;  %201 = vst [vmem:[#allocation7] sm:$0xff] %v199_v62 }
 0x26a   :  { %v200_v0 = vadd.f32 %v223_v58, %v191_v63 }
 0x26c   :  { %202 = vst [vmem:[#allocation7 + $0x8] sm:$0xff] %v200_v0 }
 0x26d   :  { %377 = shalt.err (!%p374_p6)
}
 0x26e   :  { %s378_s25 = scalar_lea.hbm %s488_s5, 256 }
 0x26f   :  { %p379_p7 = scmp.ne.s32.totalorder %s488_s5, %s378_s25  ;;  %p382_p8 = scmp.lt.u32.totalorder %s378_s25, %s488_s5 }
 0x271   :  { %p384_p9 = pnand %p382_p8, %p379_p7 }
 0x273   :  { %387 = shalt.err (!%p384_p9)
}
 0x274   :  { %214 = dma.vmem_to_hbm [thread:$0]  %s209_s23, 256, %s488_s5, [#allocation4], %s395_s28, %s395_s28, %s396_s29  }
 0x275   :  { %392 = dma.done.wait [#allocation4], 256  }
 0x276   :  { %393 = vsyncadd [#allocation4], 4294967040 }
 0x277   :  { %218 = vsyncpa [#allocation3], 1 }
 0x278   :  { %219 = vsyncpa [#allocation6], 1 }
 0x279   :  { %220 = vsyncpa [#allocation4], 1 }

// kernel: tpu_custom_call.1
= control target key start
LH: loop header
LB: loop body
LE: loop exit
PB: predicated region body
PF: predicated region fallthrough
CT: control target
= control target key end

     0   :  { %10 = vsyncpa [#allocation3], 0  ;;  %s483_s0 = inlined_call_operand.hbm [shape: f32[16,128], index: 0, kind: input, shape index: {}]   ;;  %s484_s1 = inlined_call_operand.hbm [shape: f32[128,128], index: 1, kind: input, shape index: {}]   ;;  %s485_s2 = inlined_call_operand.vmem [shape: f32[1,128], index: 2, kind: input, shape index: {}]   ;;  %s486_s3 = inlined_call_operand.vmem [shape: f32[1,128], index: 3, kind: input, shape index: {}]   ;;  %s487_s4 = inlined_call_operand.vmem [shape: f32[1,128], index: 4, kind: input, shape index: {}]   ;;  %s488_s5 = inlined_call_operand.hbm [shape: f32[16,128], index: 5, kind: output, shape index: {}]  }
   0x1   :  { %11 = vsyncpa [#allocation6], 0 }
   0x2   :  { %12 = vsyncpa [#allocation4], 0  ;;  %s394_s18 = smov [#allocation2]   ;;  %s322_s22 = scalar_lea.hbm %s483_s0, 256 }
   0x3   :  { %s18_s19 = sshll.u32 %s394_s18, 4  ;;  %p323_p0 = scmp.ne.s32.totalorder %s483_s0, %s322_s22  ;;  %s19_s19 = int_to_ptr.vmem [resolvable:$true] %s18_s19 }
   0x4   :  { %p326_p1 = scmp.lt.u32.totalorder %s322_s22, %s483_s0 }
   0x6   :  { %p328_p2 = pnand %p326_p1, %p323_p0 }
   0x8   :  { %331 = shalt.err (!%p328_p2)
}
   0x9   :  { %s332_s27 = scalar_lea.vmem %s19_s19, 256  ;;  %p337_p4 = scmp.lt.s32.totalorder %s19_s19, %s19_s19 }
   0xa   :  { %p333_p3 = scmp.ne.s32.totalorder %s19_s19, %s332_s27  ;;  %p338_p5 = scmp.lt.s32.totalorder %s332_s27, %s332_s27 }
   0xc   :  { %p339_p6 = por %p338_p5, %p337_p4 }
   0xe   :  { %p340_p7 = pnand %p339_p6, %p333_p3 }
  0x10   :  { %343 = shalt.err (!%p340_p7)
}
  0x11   :  { %s395_s28 = smov 128   ;;  %s396_s29 = smov 8  }
  0x12   :  { %24 = dma.hbm_to_vmem [thread:$0]  %s483_s0, 256, %s19_s19, [#allocation3], %s395_s28, %s395_s28, %s396_s29  }
  0x13   :  { %s397_s7 = smov [#allocation5]   ;;  %s344_s11 = scalar_lea.hbm %s484_s1, 2048 }
  0x14   :  { %s30_s8 = sshll.u32 %s397_s7, 4  ;;  %p345_p8 = scmp.ne.s32.totalorder %s484_s1, %s344_s11  ;;  %s31_s8 = int_to_ptr.vmem [resolvable:$true] %s30_s8 }
  0x15   :  { %p348_p9 = scmp.lt.u32.totalorder %s344_s11, %s484_s1 }
  0x17   :  { %p350_p10 = pnand %p348_p9, %p345_p8 }
  0x19   :  { %353 = shalt.err (!%p350_p10)
}
  0x1a   :  { %s354_s16 = scalar_lea.vmem %s31_s8, 2048  ;;  %p359_p12 = scmp.lt.s32.totalorder %s31_s8, %s31_s8 }
  0x1b   :  { %p355_p11 = scmp.ne.s32.totalorder %s31_s8, %s354_s16  ;;  %p360_p13 = scmp.lt.s32.totalorder %s354_s16, %s354_s16 }
  0x1d   :  { %p361_p0 = por %p360_p13, %p359_p12 }
  0x1f   :  { %p362_p1 = pnand %p361_p0, %p355_p11 }
  0x21   :  { %365 = shalt.err (!%p362_p1)
}
  0x22   :  { %36 = dma.hbm_to_vmem [thread:$0]  %s484_s1, 2048, %s31_s8, [#allocation6], %s395_s28, %s395_s28, %s396_s29  }
  0x23   :  { %388 = dma.done.wait [#allocation3], 256  }
  0x24   :  { %389 = vsyncadd [#allocation3], 4294967040 }
  0x25   :  { %390 = dma.done.wait [#allocation6], 2048  }
  0x26   :  { %391 = vsyncadd [#allocation6], 4294965248  ;;  %v51_v0 = vld [vmem:[#allocation5] sm:$0xff]  ;;  %v52_v1 = vld [vmem:[#allocation5 + $0x8] sm:$0xff]  ;;  %s398_s22 = smov [#allocation7]  }
  0x27   :  { %v53_v2 = vld [vmem:[#allocation5 + $0x10] sm:$0xff]  ;;  %v277_v3 = vpack.c.bf16 %v52_v1, %v51_v0  ;;  %v54_v4 = vld [vmem:[#allocation5 + $0x18] sm:$0xff]  ;;  %v55_v6 = vld [vmem:[#allocation5 + $0x20] sm:$0xff]  ;;  %s208_s23 = sshll.u32 %s398_s22, 4  ;;  %s209_s23 = int_to_ptr.vmem [resolvable:$true] %s208_s23 }
  0x28   :  { %v281_v5 = vpack.c.bf16 %v54_v4, %v53_v2  ;;  %v56_v7 = vld [vmem:[#allocation5 + $0x28] sm:$0xff]  ;;  %v49_v9 = vld [vmem:[#allocation2] sm:$0xff]  ;;  %v58_v11 = vld [vmem:[#allocation5 + $0x38] sm:$0xff]  ;;  %s366_s24 = scalar_lea.vmem %s209_s23, 256  ;;  %p371_p3 = scmp.lt.s32.totalorder %s209_s23, %s209_s23 }
  0x29   :  { %278 = vmatprep.subr.bf16.mxu0 %v277_v3  ;;  %v285_v8 = vpack.c.bf16 %v56_v7, %v55_v6  ;;  %v57_v10 = vld [vmem:[#allocation5 + $0x30] sm:$0xff]  ;;  %274 = vmatprep.mubr.f32.mxu0 %v49_v9  ;;  %v59_v13 = vld [vmem:[#allocation5 + $0x40] sm:$0xff]  ;;  %v60_v14 = vld [vmem:[#allocation5 + $0x48] sm:$0xff]  ;;  %p367_p2 = scmp.ne.s32.totalorder %s209_s23, %s366_s24  ;;  %p372_p4 = scmp.lt.s32.totalorder %s366_s24, %s366_s24 }
  0x2a   :  { %280 = vmatpush3.bf16.msra.mxu0 %v277_v3  ;;  %v289_v12 = vpack.c.bf16 %v58_v11, %v57_v10  ;;  %v293_v15 = vpack.c.bf16 %v60_v14, %v59_v13  ;;  %v61_v16 = vld [vmem:[#allocation5 + $0x50] sm:$0xff]  ;;  %v62_v17 = vld [vmem:[#allocation5 + $0x58] sm:$0xff]  ;;  %v63_v19 = vld [vmem:[#allocation5 + $0x60] sm:$0xff] }
  0x2b   :  { %282 = vmatprep.subr.bf16.mxu0 %v281_v5  ;;  %v297_v18 = vpack.c.bf16 %v62_v17, %v61_v16  ;;  %v64_v20 = vld [vmem:[#allocation5 + $0x68] sm:$0xff]  ;;  %v65_v22 = vld [vmem:[#allocation5 + $0x70] sm:$0xff]  ;;  %v66_v23 = vld [vmem:[#allocation5 + $0x78] sm:$0xff]  ;;  %p373_p5 = por %p372_p4, %p371_p3 }
  0x2c   :  { %v301_v21 = vpack.c.bf16 %v64_v20, %v63_v19  ;;  %v305_v24 = vpack.c.bf16 %v66_v23, %v65_v22  ;;  %v50_v25 = vld [vmem:[#allocation2 + $0x8] sm:$0xff]  ;;  %v221_v26 = vld [vmem:[%s485_s2] ss:$0 sm:$0xff] }
  0x2d   :  { %v222_v56 = vld [vmem:[%s486_s3] ss:$0 sm:$0xff]  ;;  %p374_p6 = pnand %p373_p5, %p367_p2 }
  0x2e   :  { %284 = vmatpush3.bf16.msra.mxu0 %v281_v5  ;;  %v223_v58 = vld [vmem:[%s487_s4] ss:$0 sm:$0xff] }
  0x2f   :  { %286 = vmatprep.subr.bf16.mxu0 %v285_v8 }
  0x32   :  { %288 = vmatpush3.bf16.msra.mxu0 %v285_v8 }
  0x33   :  { %290 = vmatprep.subr.bf16.mxu0 %v289_v12 }
  0x36   :  { %292 = vmatpush3.bf16.msra.mxu0 %v289_v12 }
  0x37   :  { %294 = vmatprep.subr.bf16.mxu0 %v293_v15 }
  0x3a   :  { %296 = vmatpush3.bf16.msra.mxu0 %v293_v15 }
  0x3b   :  { %298 = vmatprep.subr.bf16.mxu0 %v297_v18 }
  0x3e   :  { %300 = vmatpush3.bf16.msra.mxu0 %v297_v18 }
  0x3f   :  { %302 = vmatprep.subr.bf16.mxu0 %v301_v21 }
  0x42   :  { %304 = vmatpush3.bf16.msra.mxu0 %v301_v21 }
  0x43   :  { %306 = vmatprep.subr.bf16.mxu0 %v305_v24 }
  0x46   :  { %308 = vmatpush3.bf16.msra.mxu0 %v305_v24 }
  0x49   :  { %275 = vmatmul.mubr.f32.vlgmr.msra.gmra.mrb[0].mxu0 %v50_v25 }
 0x11c   :  { %v276_v27 = vpop.f32.mrb[0].mxu0 }
 0x11d   :  { %v146_v28 = vadd.f32 %v276_v27, %v221_v26  ;;  %v140_v29 = vpop.f32.mrb[1].mxu0 }
 0x11e   :  { %v141_v30 = vadd.f32 %v221_v26, %v140_v29 }
 0x11f   :  { %v153_v31 = vmul.f32 0.70710677, %v146_v28  ;;  %v150_v39 = vmul.f32 0.5, %v146_v28 }
 0x120   :  { %v152_v32 = vmul.f32 0.70710677, %v141_v30  ;;  %v149_v35 = vmul.f32 0.5, %v141_v30 }
 0x121   :  { %314 = verf.f32 %v153_v31 }
 0x122   :  { %316 = verf.f32 %v152_v32 }
 0x12b   :  { %v315_v33 = vpop.eup %314 }
 0x12c   :  { %v317_v34 = vpop.eup %316  ;;  %v157_v38 = vadd.f32 1.0, %v315_v33 }
 0x12d   :  { %v156_v36 = vadd.f32 1.0, %v317_v34 }
 0x12e   :  { %v159_v40 = vmul.f32 %v157_v38, %v150_v39 }
 0x12f   :  { %v158_v37 = vmul.f32 %v156_v36, %v149_v35 }
 0x131   :  { %160 = vadd.xlane.f32.xlu0 %v158_v37 }
 0x135   :  { %162 = vadd.xlane.f32.xlu0 %v159_v40 }
 0x1be   :  { %v161_v41 = vpop.xlane.xlu0 %160 }
 0x1bf   :  { %v165_v42 = vmul.f32 0.0078125, %v161_v41 }
 0x1c1   :  { %v167_v43 = vsub.f32 %v158_v37, %v165_v42 }
 0x1c2   :  { %v163_v44 = vpop.xlane.xlu0 %162 }
 0x1c3   :  { %v166_v45 = vmul.f32 0.0078125, %v163_v44  ;;  %v169_v46 = vmul.f32 %v167_v43, %v167_v43 }
 0x1c5   :  { %v168_v47 = vsub.f32 %v159_v40, %v166_v45  ;;  %171 = vadd.xlane.f32.xlu1 %v169_v46 }
 0x1c7   :  { %v170_v48 = vmul.f32 %v168_v47, %v168_v47 }
 0x1c9   :  { %173 = vadd.xlane.f32.xlu1 %v170_v48 }
 0x252   :  { %v172_v49 = vpop.xlane.xlu1 %171 }
 0x253   :  { %v175_v50 = vmul.f32 0.0078125, %v172_v49 }
 0x255   :  { %v177_v51 = vadd.f32 1e-05, %v175_v50 }
 0x256   :  { %v174_v52 = vpop.xlane.xlu1 %173 }
 0x257   :  { %318 = vrsqrt.f32 %v177_v51  ;;  %v176_v53 = vmul.f32 0.0078125, %v174_v52 }
 0x259   :  { %v178_v54 = vadd.f32 1e-05, %v176_v53 }
 0x25b   :  { %320 = vrsqrt.f32 %v178_v54 }
 0x261   :  { %v319_v55 = vpop.eup %318 }
 0x262   :  { %v181_v57 = vmul.f32 %v319_v55, %v167_v43 }
 0x264   :  { %v190_v59 = vmul.f32 %v222_v56, %v181_v57 }
 0x265   :  { %v321_v60 = vpop.eup %320 }
 0x266   :  { %v182_v61 = vmul.f32 %v321_v60, %v168_v47  ;;  %v199_v62 = vadd.f32 %v223_v58, %v190_v59 }
 0x268   :  { %v191_v63 = vmul.f32 %v222_v56, %v182_v61  ;;  %201 = vst [vmem:[#allocation7] sm:$0xff] %v199_v62 }
 0x26a   :  { %v200_v0 = vadd.f32 %v223_v58, %v191_v63 }
 0x26c   :  { %202 = vst [vmem:[#allocation7 + $0x8] sm:$0xff] %v200_v0 }
 0x26d   :  { %377 = shalt.err (!%p374_p6)
}
 0x26e   :  { %s378_s25 = scalar_lea.hbm %s488_s5, 256 }
 0x26f   :  { %p379_p7 = scmp.ne.s32.totalorder %s488_s5, %s378_s25  ;;  %p382_p8 = scmp.lt.u32.totalorder %s378_s25, %s488_s5 }
 0x271   :  { %p384_p9 = pnand %p382_p8, %p379_p7 }
 0x273   :  { %387 = shalt.err (!%p384_p9)
}
 0x274   :  { %214 = dma.vmem_to_hbm [thread:$0]  %s209_s23, 256, %s488_s5, [#allocation4], %s395_s28, %s395_s28, %s396_s29  }
 0x275   :  { %392 = dma.done.wait [#allocation4], 256  }
 0x276   :  { %393 = vsyncadd [#allocation4], 4294967040 }
 0x277   :  { %218 = vsyncpa [#allocation3], 1 }
 0x278   :  { %219 = vsyncpa [#allocation6], 1 }
 0x279   :  { %220 = vsyncpa [#allocation4], 1 }

</bundles_post_ra>
